<compile_context>
chip_gen: v5e
topology: v5e:2x2
jax: 0.10.0
libtpu: 0.0.40
codegen_flags: <defaults>
</compile_context>

<pallas_src>
import functools

import jax
import jax.numpy as jnp
from jax.experimental import pallas as pl
from jax.experimental.pallas import tpu as pltpu

LOG_STD_MAX = 2.0
LOG_STD_MIN = -20.0


def _round_up(x, m):
    return ((x + m - 1) // m) * m


def _police_net_kernel(
    x_ref,     # [TB, S]       bf16
    w1_ref,    # [S, H]        bf16
    b1_ref,    # [1, H]        f32
    w2_ref,    # [H, H]        bf16
    b2_ref,    # [1, H]        f32
    wh_ref,    # [H, NL]       bf16  (fused, zero-padded mean|logstd heads)
    bh_ref,    # [1, NL]       f32
    out_ref,   # [TB, NL]      f32   (mean in [:, :A], log_std in [:, ls_off:ls_off+A])
    *,
    ls_off,    # python int: first lane of the log_std half
):
    # fc1 + relu  (bf16 operands, f32 MXU accumulation)
    h1 = jnp.dot(x_ref[...], w1_ref[...],
                 preferred_element_type=jnp.float32) + b1_ref[...]
    h1 = jnp.maximum(h1, 0.0)

    # fc2 + relu
    h2 = jnp.dot(h1.astype(jnp.bfloat16), w2_ref[...],
                 preferred_element_type=jnp.float32) + b2_ref[...]
    h2 = jnp.maximum(h2, 0.0)

    # fused fc_mean | fc_logstd head: single MXU matmul, lane-dense result
    z = jnp.dot(h2.astype(jnp.bfloat16), wh_ref[...],
                preferred_element_type=jnp.float32) + bh_ref[...]

    # log_std = LOG_STD_MIN + 0.5*(MAX-MIN)*(tanh(s)+1)  ==  a*tanh(s) + b,
    # applied only to the log_std lanes (lane >= ls_off); mean lanes pass through.
    a = 0.5 * (LOG_STD_MAX - LOG_STD_MIN)
    b = LOG_STD_MIN + a
    lane = jax.lax.broadcasted_iota(jnp.int32, z.shape, 1)
    out = jnp.where(lane >= ls_off, a * jnp.tanh(z) + b, z)

    # One full-width, 128-lane-aligned dense store.
    out_ref[...] = out.astype(out_ref.dtype)


def prepare_params(params):
    """Hoisted (once-per-parameter-update) head fusion + bf16 casts.

    Returns the fused/quantized weights used by police_net_forward so the
    per-call hot path launches only the pallas_call (plus the x pad/cast).
    """
    H, A = params["wm"].shape
    if A <= 64:
        nlanes, ls_off = 128, 64           # single 128-lane slab: mean | log_std
    else:
        apad = _round_up(A, 128)           # fallback layout for large action dims
        nlanes, ls_off = 2 * apad, apad

    wh = jnp.zeros((H, nlanes), jnp.float32)
    wh = wh.at[:, :A].set(params["wm"]).at[:, ls_off:ls_off + A].set(params["wls"])
    bh = jnp.zeros((1, nlanes), jnp.float32)
    bh = bh.at[:, :A].set(params["bm"]).at[:, ls_off:ls_off + A].set(params["bls"])

    bf = jnp.bfloat16
    return dict(
        w1=params["w1"].astype(bf), b1=params["b1"],
        w2=params["w2"].astype(bf), b2=params["b2"],
        wh=wh.astype(bf), bh=bh,
        action_dim=int(A), ls_off=int(ls_off), nlanes=int(nlanes),
    )


def _choose_tb(B):
    """Batch-tile rows: multiple of 16 (bf16 sublanes); big tiles to amortize the
    ~0.35us per-grid-step cost; capped so large batches keep >= 4 grid steps
    (v7x: 2 TensorCores share the 'parallel' batch axis)."""
    br = _round_up(max(B, 16), 16)
    if br <= 512:
        return br
    tb = _round_up(pl.cdiv(br, 4), 128)
    return int(min(2048, max(512, tb)))


def police_net_forward(x, fused):
    """x: [B, state_dim] float32. fused: output of prepare_params()."""
    B, S = x.shape
    A = fused["action_dim"]
    ls_off = fused["ls_off"]
    nlanes = fused["nlanes"]

    TB = _choose_tb(B)
    Bp = pl.cdiv(B, TB) * TB
    xb = x.astype(jnp.bfloat16)
    if Bp != B:
        xb = jnp.pad(xb, ((0, Bp - B), (0, 0)))
    grid = (Bp // TB,)

    kernel = functools.partial(_police_net_kernel, ls_off=ls_off)

    def weight_spec(a):
        # Full-array block, constant index_map -> stays VMEM-resident across steps.
        return pl.BlockSpec(a.shape, lambda i: (0,) * a.ndim)

    out = pl.pallas_call(
        kernel,
        out_shape=jax.ShapeDtypeStruct((Bp, nlanes), jnp.float32),
        grid=grid,
        in_specs=[
            pl.BlockSpec((TB, S), lambda i: (i, 0)),   # x: tiled over batch
            weight_spec(fused["w1"]), weight_spec(fused["b1"]),
            weight_spec(fused["w2"]), weight_spec(fused["b2"]),
            weight_spec(fused["wh"]), weight_spec(fused["bh"]),
        ],
        out_specs=pl.BlockSpec((TB, nlanes), lambda i: (i, 0)),
        compiler_params=pltpu.CompilerParams(
            dimension_semantics=("parallel",)),        # v7x: shard batch over 2 TCs
    )(xb, fused["w1"], fused["b1"], fused["w2"], fused["b2"],
      fused["wh"], fused["bh"])

    mean = out[:B, :A]
    log_std = out[:B, ls_off:ls_off + A]
    return mean, log_std


def init_params(key, state_dim, hidden_dim, action_dim):
    """Deterministic init matching torch.nn.Linear shapes (weights stored [in, out])."""
    ks = jax.random.split(key, 8)

    def lin(kw, kb, fan_in, fan_out):
        bound = 1.0 / jnp.sqrt(fan_in)
        w = jax.random.uniform(kw, (fan_in, fan_out), jnp.float32, -bound, bound)
        b = jax.random.uniform(kb, (1, fan_out), jnp.float32, -bound, bound)
        return w, b

    w1, b1 = lin(ks[0], ks[1], state_dim, hidden_dim)
    w2, b2 = lin(ks[2], ks[3], hidden_dim, hidden_dim)
    wm, bm = lin(ks[4], ks[5], hidden_dim, action_dim)
    wls, bls = lin(ks[6], ks[7], hidden_dim, action_dim)
    return dict(w1=w1, b1=b1, w2=w2, b2=b2, wm=wm, bm=bm, wls=wls, bls=bls)


def police_net_ref(x, p):
    """Plain-JAX reference with the same bf16 operand quantization as the kernel."""
    bf = jnp.bfloat16
    h = jax.nn.relu(jnp.dot(x.astype(bf), p["w1"].astype(bf),
                            preferred_element_type=jnp.float32) + p["b1"])
    h = jax.nn.relu(jnp.dot(h.astype(bf), p["w2"].astype(bf),
                            preferred_element_type=jnp.float32) + p["b2"])
    mean = jnp.dot(h.astype(bf), p["wm"].astype(bf),
                   preferred_element_type=jnp.float32) + p["bm"]
    s = jnp.dot(h.astype(bf), p["wls"].astype(bf),
                preferred_element_type=jnp.float32) + p["bls"]
    a = 0.5 * (LOG_STD_MAX - LOG_STD_MIN)
    log_std = a * jnp.tanh(s) + (LOG_STD_MIN + a)
    return mean, log_std


if __name__ == "__main__":
    # Small shapes implied by the module: state_dim -> hidden_dim -> action_dim MLP.
    state_dim, hidden_dim, action_dim = 8, 32, 4

    key = jax.random.PRNGKey(0)
    kx, kp, kx2 = jax.random.split(key, 3)
    params = init_params(kp, state_dim, hidden_dim, action_dim)
    fused = prepare_params(params)   # hoisted: once per parameter update

    # Case 1: batch=200 -> single 208-row tile (16-multiple rounding, padded rows).
    x = jax.random.normal(kx, (200, state_dim), jnp.float32)
    mean, log_std = police_net_forward(x, fused)
    jax.block_until_ready((mean, log_std))
    mean_ref, log_std_ref = police_net_ref(x, params)
    assert jnp.allclose(mean, mean_ref, atol=5e-3, rtol=5e-3)
    assert jnp.allclose(log_std, log_std_ref, atol=5e-3, rtol=5e-3)

    # Case 2: batch=1100 -> TB=512, multi-step 'parallel' batch grid.
    x2 = jax.random.normal(kx2, (1100, state_dim), jnp.float32)
    mean2, log_std2 = police_net_forward(x2, fused)
    jax.block_until_ready((mean2, log_std2))
    mean2_ref, log_std2_ref = police_net_ref(x2, params)
    assert jnp.allclose(mean2, mean2_ref, atol=5e-3, rtol=5e-3)
    assert jnp.allclose(log_std2, log_std2_ref, atol=5e-3, rtol=5e-3)

    print("KERNEL_OK")
</pallas_src>

<mosaic_0001>
module attributes {stable_mosaic.version = 11 : i64} {
  func.func @_police_net_kernel(%arg0: i32, %arg1: memref<208x8xbf16, #tpu.memory_space<vmem>>, %arg2: memref<8x32xbf16, #tpu.memory_space<vmem>>, %arg3: memref<1x32xf32, #tpu.memory_space<vmem>>, %arg4: memref<32x32xbf16, #tpu.memory_space<vmem>>, %arg5: memref<1x32xf32, #tpu.memory_space<vmem>>, %arg6: memref<32x128xbf16, #tpu.memory_space<vmem>>, %arg7: memref<1x128xf32, #tpu.memory_space<vmem>>, %arg8: memref<208x128xf32, #tpu.memory_space<vmem>>) attributes {dimension_semantics = [#tpu.dimension_semantics<parallel>], iteration_bounds = array<i64: 1>, scalar_prefetch = 0 : i64, scratch_operands = 0 : i64, tpu.core_type = #tpu.core_type<tc>, window_params = [{transform_indices = @transform_0, window_bounds = array<i64: 208, 8>}, {pipeline_mode = #tpu.pipeline_mode<synchronous>, transform_indices = @transform_1, window_bounds = array<i64: 8, 32>}, {pipeline_mode = #tpu.pipeline_mode<synchronous>, transform_indices = @transform_2, window_bounds = array<i64: 1, 32>}, {pipeline_mode = #tpu.pipeline_mode<synchronous>, transform_indices = @transform_3, window_bounds = array<i64: 32, 32>}, {pipeline_mode = #tpu.pipeline_mode<synchronous>, transform_indices = @transform_4, window_bounds = array<i64: 1, 32>}, {pipeline_mode = #tpu.pipeline_mode<synchronous>, transform_indices = @transform_5, window_bounds = array<i64: 32, 128>}, {pipeline_mode = #tpu.pipeline_mode<synchronous>, transform_indices = @transform_6, window_bounds = array<i64: 1, 128>}, {transform_indices = @transform_7, window_bounds = array<i64: 208, 128>}]} {
    %c0 = arith.constant 0 : index
    %c0_0 = arith.constant 0 : index
    %0 = vector.load %arg1[%c0, %c0_0] : memref<208x8xbf16, #tpu.memory_space<vmem>>, vector<208x8xbf16>
    %c0_1 = arith.constant 0 : index
    %c0_2 = arith.constant 0 : index
    %1 = vector.load %arg2[%c0_1, %c0_2] : memref<8x32xbf16, #tpu.memory_space<vmem>>, vector<8x32xbf16>
    %cst = arith.constant dense<0.000000e+00> : vector<208x32xf32>
    %2 = tpu.matmul %0, %1, %cst {dimension_numbers = #tpu.dot_dimension_numbers<[1], [0], [0], [1], [0, 0, 1, 1], [], []>} : vector<208x8xbf16>, vector<8x32xbf16>, vector<208x32xf32> -> vector<208x32xf32>
    %c0_3 = arith.constant 0 : index
    %c0_4 = arith.constant 0 : index
    %3 = vector.load %arg3[%c0_3, %c0_4] : memref<1x32xf32, #tpu.memory_space<vmem>>, vector<1x32xf32>
    %4 = vector.broadcast %3 : vector<1x32xf32> to vector<208x32xf32>
    %5 = arith.addf %2, %4 : vector<208x32xf32>
    %cst_5 = arith.constant 0.000000e+00 : f32
    %6 = vector.broadcast %cst_5 : f32 to vector<208x32xf32>
    %7 = arith.maximumf %5, %6 : vector<208x32xf32>
    %8 = arith.truncf %7 : vector<208x32xf32> to vector<208x32xbf16>
    %c0_6 = arith.constant 0 : index
    %c0_7 = arith.constant 0 : index
    %9 = vector.load %arg4[%c0_6, %c0_7] : memref<32x32xbf16, #tpu.memory_space<vmem>>, vector<32x32xbf16>
    %cst_8 = arith.constant dense<0.000000e+00> : vector<208x32xf32>
    %10 = tpu.matmul %8, %9, %cst_8 {dimension_numbers = #tpu.dot_dimension_numbers<[1], [0], [0], [1], [0, 0, 1, 1], [], []>} : vector<208x32xbf16>, vector<32x32xbf16>, vector<208x32xf32> -> vector<208x32xf32>
    %c0_9 = arith.constant 0 : index
    %c0_10 = arith.constant 0 : index
    %11 = vector.load %arg5[%c0_9, %c0_10] : memref<1x32xf32, #tpu.memory_space<vmem>>, vector<1x32xf32>
    %12 = vector.broadcast %11 : vector<1x32xf32> to vector<208x32xf32>
    %13 = arith.addf %10, %12 : vector<208x32xf32>
    %cst_11 = arith.constant 0.000000e+00 : f32
    %14 = vector.broadcast %cst_11 : f32 to vector<208x32xf32>
    %15 = arith.maximumf %13, %14 : vector<208x32xf32>
    %16 = arith.truncf %15 : vector<208x32xf32> to vector<208x32xbf16>
    %c0_12 = arith.constant 0 : index
    %c0_13 = arith.constant 0 : index
    %17 = vector.load %arg6[%c0_12, %c0_13] : memref<32x128xbf16, #tpu.memory_space<vmem>>, vector<32x128xbf16>
    %cst_14 = arith.constant dense<0.000000e+00> : vector<208x128xf32>
    %18 = tpu.matmul %16, %17, %cst_14 {dimension_numbers = #tpu.dot_dimension_numbers<[1], [0], [0], [1], [0, 0, 1, 1], [], []>} : vector<208x32xbf16>, vector<32x128xbf16>, vector<208x128xf32> -> vector<208x128xf32>
    %c0_15 = arith.constant 0 : index
    %c0_16 = arith.constant 0 : index
    %19 = vector.load %arg7[%c0_15, %c0_16] : memref<1x128xf32, #tpu.memory_space<vmem>>, vector<1x128xf32>
    %20 = vector.broadcast %19 : vector<1x128xf32> to vector<208x128xf32>
    %21 = arith.addf %18, %20 : vector<208x128xf32>
    %22 = tpu.iota {dimensions = array<i32: 1>} : vector<208x128xi32>
    %c64_i32 = arith.constant 64 : i32
    %23 = vector.broadcast %c64_i32 : i32 to vector<208x128xi32>
    %24 = arith.cmpi sge, %22, %23 : vector<208x128xi32>
    %25 = math.tanh %21 : vector<208x128xf32>
    %cst_17 = arith.constant 1.100000e+01 : f32
    %26 = vector.broadcast %cst_17 : f32 to vector<208x128xf32>
    %27 = arith.mulf %26, %25 : vector<208x128xf32>
    %cst_18 = arith.constant -9.000000e+00 : f32
    %28 = vector.broadcast %cst_18 : f32 to vector<208x128xf32>
    %29 = arith.addf %27, %28 : vector<208x128xf32>
    %30 = arith.select %24, %29, %21 : vector<208x128xi1>, vector<208x128xf32>
    %c0_19 = arith.constant 0 : index
    %c0_20 = arith.constant 0 : index
    %31 = vector.load %arg8[%c0_19, %c0_20] : memref<208x128xf32, #tpu.memory_space<vmem>>, vector<208x128xf32>
    tpu.vector_store %arg8[%c0_19, %c0_20], %30 {strides = array<i32>} : memref<208x128xf32, #tpu.memory_space<vmem>>, vector<208x128xf32>,
    return
  }
  func.func @transform_0(%arg0: i32) -> (i32, i32) {
    %c0_i32 = arith.constant 0 : i32
    %c0_i32_0 = arith.constant 0 : i32
    return %arg0, %c0_i32 : i32, i32
  }
  func.func @transform_1(%arg0: i32) -> (i32, i32) {
    %c0_i32 = arith.constant 0 : i32
    %c0_i32_0 = arith.constant 0 : i32
    %c0_i32_1 = arith.constant 0 : i32
    return %c0_i32, %c0_i32_0 : i32, i32
  }
  func.func @transform_2(%arg0: i32) -> (i32, i32) {
    %c0_i32 = arith.constant 0 : i32
    %c0_i32_0 = arith.constant 0 : i32
    %c0_i32_1 = arith.constant 0 : i32
    return %c0_i32, %c0_i32_0 : i32, i32
  }
  func.func @transform_3(%arg0: i32) -> (i32, i32) {
    %c0_i32 = arith.constant 0 : i32
    %c0_i32_0 = arith.constant 0 : i32
    %c0_i32_1 = arith.constant 0 : i32
    return %c0_i32, %c0_i32_0 : i32, i32
  }
  func.func @transform_4(%arg0: i32) -> (i32, i32) {
    %c0_i32 = arith.constant 0 : i32
    %c0_i32_0 = arith.constant 0 : i32
    %c0_i32_1 = arith.constant 0 : i32
    return %c0_i32, %c0_i32_0 : i32, i32
  }
  func.func @transform_5(%arg0: i32) -> (i32, i32) {
    %c0_i32 = arith.constant 0 : i32
    %c0_i32_0 = arith.constant 0 : i32
    %c0_i32_1 = arith.constant 0 : i32
    return %c0_i32, %c0_i32_0 : i32, i32
  }
  func.func @transform_6(%arg0: i32) -> (i32, i32) {
    %c0_i32 = arith.constant 0 : i32
    %c0_i32_0 = arith.constant 0 : i32
    %c0_i32_1 = arith.constant 0 : i32
    return %c0_i32, %c0_i32_0 : i32, i32
  }
  func.func @transform_7(%arg0: i32) -> (i32, i32) {
    %c0_i32 = arith.constant 0 : i32
    %c0_i32_0 = arith.constant 0 : i32
    return %arg0, %c0_i32 : i32, i32
  }
}

</mosaic_0001>

<bundles_post_ra>
// kernel: tpu_custom_call.1
= control target key start
LH: loop header
LB: loop body
LE: loop exit
PB: predicated region body
PF: predicated region fallthrough
CT: control target
= control target key end

     0   :  { %vm164_vm0 = vcmask 1043456   ;;  %vm124_vm1 = vcmask 64512   ;;  %s1238_s0 = inlined_call_operand.vmem [shape: bf16[208,8], index: 0, kind: input, shape index: {}]   ;;  %s1239_s1 = inlined_call_operand.vmem [shape: bf16[8,32], index: 1, kind: input, shape index: {}]   ;;  %s1240_s2 = inlined_call_operand.vmem [shape: f32[1,32], index: 2, kind: input, shape index: {}]   ;;  %s1241_s3 = inlined_call_operand.vmem [shape: bf16[32,32], index: 3, kind: input, shape index: {}]   ;;  %s1242_s4 = inlined_call_operand.vmem [shape: f32[1,32], index: 4, kind: input, shape index: {}]   ;;  %s1243_s5 = inlined_call_operand.vmem [shape: bf16[32,128], index: 5, kind: input, shape index: {}]   ;;  %s1244_s6 = inlined_call_operand.vmem [shape: f32[1,128], index: 6, kind: input, shape index: {}]   ;;  %s1245_s7 = inlined_call_operand.hbm [shape: f32[208,128], index: 7, kind: output, shape index: {}]  }
   0x1   :  { %v54_v0 = vld [vmem:[%s1239_s1] sm:$0xf] }
   0x2   :  { %v166_v1 = vsel %vm164_vm0, %v54_v0, 0  ;;  %v845_v2 = vld [vmem:[%s1238_s0] sm:$0xff] }
   0x3   :  { %175 = vmatpush.bf16.msra.mxu0 %v166_v1  ;;  %862 = vmatpush.bf16.msra.mxu3 %v166_v1 }
   0x4   :  { %12 = vsyncpa [#allocation3], 0  ;;  %v846_v3 = vld [vmem:[%s1238_s0 + $0x8] sm:$0xff]  ;;  %v847_v4 = vld [vmem:[%s1238_s0 + $0x10] sm:$0xff]  ;;  %vm301_vm2 = vcmask 261120   ;;  %s726_s16 = sshll.u32 %s1245_s7, 4  ;;  %s727_s16 = int_to_ptr.hbm [resolvable:$true] %s726_s16 }
   0x5   :  { %v855_v5 = vld [vmem:[%s1238_s0 + $0x50] sm:$0xff]  ;;  %v848_v6 = vld [vmem:[%s1238_s0 + $0x18] sm:$0xff]  ;;  %v849_v8 = vld [vmem:[%s1238_s0 + $0x20] sm:$0xff]  ;;  %s952_s17 = smov 128   ;;  %s953_s18 = smov 8  }
   0x6   :  { %790 = vmatmul.msk.bf16.vlgmr.msra.gmra.mxu0 %vm124_vm1, %v845_v2  ;;  %800 = vmatmul.msk.bf16.vlgmr.msra.gmra.mxu3 %vm124_vm1, %v855_v5  ;;  %v856_v7 = vld [vmem:[%s1238_s0 + $0x58] sm:$0xff]  ;;  %v857_v9 = vld [vmem:[%s1238_s0 + $0x60] sm:$0xff]  ;;  %v850_v10 = vld [vmem:[%s1238_s0 + $0x28] sm:$0xff] }
   0x7   :  { %v851_v11 = vld [vmem:[%s1238_s0 + $0x30] sm:$0xff]  ;;  %v859_v12 = vld [vmem:[%s1241_s3 + $0x8] sm:$0xff]  ;;  %v858_v13 = vld [vmem:[%s1241_s3] sm:$0xff] }
   0x8   :  { %347 = vmatpush.bf16.msra.mxu1 %v859_v12  ;;  %863 = vmatpush.bf16.msrb.mxu3 %v859_v12  ;;  %v852_v14 = vld [vmem:[%s1238_s0 + $0x38] sm:$0xff]  ;;  %v853_v15 = vld [vmem:[%s1238_s0 + $0x40] sm:$0xff]  ;;  %v854_v24 = vld [vmem:[%s1238_s0 + $0x48] sm:$0xff] }
   0x9   :  { %v1053_v17 = vld [vmem:[%s1240_s2] ss:$0 sm:$0xff] }
   0xc   :  { %348 = vmatpush.bf16.msra.mxu1 %v858_v13  ;;  %864 = vmatpush.bf16.msrb.mxu3 %v858_v13 }
  0x16   :  { %791 = vmatmul.msk.bf16.gmra.mxu0 %vm124_vm1, %v846_v3  ;;  %801 = vmatmul.msk.bf16.gmra.mxu3 %vm124_vm1, %v856_v7 }
  0x26   :  { %792 = vmatmul.msk.bf16.gmra.mxu0 %vm124_vm1, %v847_v4  ;;  %802 = vmatmul.msk.bf16.gmra.mxu3 %vm124_vm1, %v857_v9 }
  0x36   :  { %793 = vmatmul.msk.bf16.gmra.mxu0 %vm124_vm1, %v848_v6 }
  0x46   :  { %794 = vmatmul.msk.bf16.gmra.mxu0 %vm124_vm1, %v849_v8 }
  0x56   :  { %795 = vmatmul.msk.bf16.gmra.mxu0 %vm124_vm1, %v850_v10 }
  0x66   :  { %796 = vmatmul.msk.bf16.gmra.mxu0 %vm124_vm1, %v851_v11 }
  0x76   :  { %797 = vmatmul.msk.bf16.gmra.mxu0 %vm124_vm1, %v852_v14 }
  0x83   :  { %v177_v16 = vpop.f32.mrf.mxu0 }
  0x84   :  { %v178_v18 = vadd.f32 %v1053_v17, %v177_v16 }
  0x86   :  { %798 = vmatmul.msk.bf16.gmra.mxu0 %vm124_vm1, %v853_v15  ;;  %v242_v21 = vmax.f32 %v178_v18, 0.0 }
  0x89   :  { %v227_v34 = vpop.f32.mrf.mxu3 }
  0x8a   :  { %v228_v39 = vadd.f32 %v1053_v17, %v227_v34 }
  0x8b   :  { %v179_v19 = vpop.f32.mrf.mxu0 }
  0x8c   :  { %v180_v20 = vadd.f32 %v1053_v17, %v179_v19  ;;  %v262_v43 = vmax.f32 %v228_v39, 0.0 }
  0x8e   :  { %v243_v22 = vmax.f32 %v180_v20, 0.0 }
  0x90   :  { %v268_v23 = vpack.c.bf16 %v243_v22, %v242_v21 }
  0x91   :  { %v229_v41 = vpop.f32.mrf.mxu3 }
  0x92   :  { %811 = vmatmul.msk.bf16.vlgmr.msra.gmra.mxu1 %vm301_vm2, %v268_v23  ;;  %v230_v44 = vadd.f32 %v1053_v17, %v229_v41 }
  0x93   :  { %v182_v25 = vpop.f32.mrf.mxu0 }
  0x94   :  { %v183_v26 = vadd.f32 %v1053_v17, %v182_v25  ;;  %v263_v45 = vmax.f32 %v230_v44, 0.0 }
  0x96   :  { %799 = vmatmul.msk.bf16.gmra.mxu0 %vm124_vm1, %v854_v24  ;;  %v244_v29 = vmax.f32 %v183_v26, 0.0  ;;  %v278_v46 = vpack.c.bf16 %v263_v45, %v262_v43  ;;  %v861_v26 = vld [vmem:[%s1243_s5 + $0x8] sm:$0xff] }
  0x97   :  { %519 = vmatpush.bf16.msra.mxu2 %v861_v26  ;;  %865 = vmatpush.bf16.msra.mxu3 %v861_v26 }
  0x98   :  { %821 = vmatmul.msk.bf16.vlgmr.msrb.gmra.mxu3 %vm301_vm2, %v278_v46 }
  0x99   :  { %v232_v48 = vpop.f32.mrf.mxu3 }
  0x9a   :  { %v233_v53 = vadd.f32 %v1053_v17, %v232_v48 }
  0x9b   :  { %v184_v27 = vpop.f32.mrf.mxu0 }
  0x9c   :  { %v185_v28 = vadd.f32 %v1053_v17, %v184_v27  ;;  %v264_v57 = vmax.f32 %v233_v53, 0.0  ;;  %v860_v27 = vld [vmem:[%s1243_s5] sm:$0xff] }
  0x9d   :  { %520 = vmatpush.bf16.msra.mxu2 %v860_v27  ;;  %866 = vmatpush.bf16.msra.mxu3 %v860_v27 }
  0x9e   :  { %v245_v30 = vmax.f32 %v185_v28, 0.0 }
  0xa0   :  { %v269_v31 = vpack.c.bf16 %v245_v30, %v244_v29 }
  0xa1   :  { %v234_v55 = vpop.f32.mrf.mxu3 }
  0xa2   :  { %812 = vmatmul.msk.bf16.gmra.mxu1 %vm301_vm2, %v269_v31  ;;  %v235_v58 = vadd.f32 %v1053_v17, %v234_v55 }
  0xa3   :  { %v187_v32 = vpop.f32.mrf.mxu0 }
  0xa4   :  { %v188_v33 = vadd.f32 %v1053_v17, %v187_v32  ;;  %v265_v59 = vmax.f32 %v235_v58, 0.0 }
  0xa6   :  { %v246_v37 = vmax.f32 %v188_v33, 0.0  ;;  %v279_v60 = vpack.c.bf16 %v265_v59, %v264_v57 }
  0xa8   :  { %822 = vmatmul.msk.bf16.gmra.mxu3 %vm301_vm2, %v279_v60 }
  0xa9   :  { %v237_v62 = vpop.f32.mrf.mxu3 }
  0xaa   :  { %v238_v3 = vadd.f32 %v1053_v17, %v237_v62 }
  0xab   :  { %v189_v35 = vpop.f32.mrf.mxu0 }
  0xac   :  { %v190_v36 = vadd.f32 %v1053_v17, %v189_v35  ;;  %v266_v7 = vmax.f32 %v238_v3, 0.0 }
  0xae   :  { %v247_v38 = vmax.f32 %v190_v36, 0.0 }
  0xb0   :  { %v270_v40 = vpack.c.bf16 %v247_v38, %v246_v37 }
  0xb1   :  { %v239_v5 = vpop.f32.mrf.mxu3 }
  0xb2   :  { %813 = vmatmul.msk.bf16.gmra.mxu1 %vm301_vm2, %v270_v40  ;;  %v240_v8 = vadd.f32 %v1053_v17, %v239_v5 }
  0xb3   :  { %v192_v42 = vpop.f32.mrf.mxu0 }
  0xb4   :  { %v193_v47 = vadd.f32 %v1053_v17, %v192_v42  ;;  %v267_v9 = vmax.f32 %v240_v8, 0.0  ;;  %v1104_v42 = vld [vmem:[%s1242_s4] ss:$0 sm:$0xff] }
  0xb6   :  { %v248_v51 = vmax.f32 %v193_v47, 0.0  ;;  %v280_v10 = vpack.c.bf16 %v267_v9, %v266_v7 }
  0xb8   :  { %823 = vmatmul.msk.bf16.gmra.mxu3 %vm301_vm2, %v280_v10 }
  0xbb   :  { %v194_v49 = vpop.f32.mrf.mxu0 }
  0xbc   :  { %v195_v50 = vadd.f32 %v1053_v17, %v194_v49 }
  0xbe   :  { %v249_v52 = vmax.f32 %v195_v50, 0.0 }
  0xc0   :  { %v271_v54 = vpack.c.bf16 %v249_v52, %v248_v51 }
  0xc2   :  { %814 = vmatmul.msk.bf16.gmra.mxu1 %vm301_vm2, %v271_v54 }
  0xc3   :  { %v197_v56 = vpop.f32.mrf.mxu0 }
  0xc4   :  { %v198_v61 = vadd.f32 %v1053_v17, %v197_v56 }
  0xc6   :  { %v250_v1 = vmax.f32 %v198_v61, 0.0 }
  0xcb   :  { %v199_v63 = vpop.f32.mrf.mxu0 }
  0xcc   :  { %v200_v0 = vadd.f32 %v1053_v17, %v199_v63 }
  0xce   :  { %v251_v2 = vmax.f32 %v200_v0, 0.0 }
  0xd0   :  { %v272_v4 = vpack.c.bf16 %v251_v2, %v250_v1 }
  0xd2   :  { %815 = vmatmul.msk.bf16.gmra.mxu1 %vm301_vm2, %v272_v4 }
  0xd3   :  { %v202_v6 = vpop.f32.mrf.mxu0 }
  0xd4   :  { %v203_v11 = vadd.f32 %v1053_v17, %v202_v6 }
  0xd6   :  { %v252_v14 = vmax.f32 %v203_v11, 0.0 }
  0xdb   :  { %v204_v12 = vpop.f32.mrf.mxu0 }
  0xdc   :  { %v205_v13 = vadd.f32 %v1053_v17, %v204_v12 }
  0xde   :  { %v253_v15 = vmax.f32 %v205_v13, 0.0 }
  0xe0   :  { %v273_v16 = vpack.c.bf16 %v253_v15, %v252_v14 }
  0xe2   :  { %816 = vmatmul.msk.bf16.gmra.mxu1 %vm301_vm2, %v273_v16 }
  0xe3   :  { %v207_v18 = vpop.f32.mrf.mxu0 }
  0xe4   :  { %v208_v19 = vadd.f32 %v1053_v17, %v207_v18 }
  0xe6   :  { %v254_v22 = vmax.f32 %v208_v19, 0.0 }
  0xeb   :  { %v209_v20 = vpop.f32.mrf.mxu0 }
  0xec   :  { %v210_v21 = vadd.f32 %v1053_v17, %v209_v20 }
  0xee   :  { %v255_v23 = vmax.f32 %v210_v21, 0.0 }
  0xf0   :  { %v274_v24 = vpack.c.bf16 %v255_v23, %v254_v22 }
  0xf2   :  { %817 = vmatmul.msk.bf16.gmra.mxu1 %vm301_vm2, %v274_v24 }
  0xf3   :  { %v212_v25 = vpop.f32.mrf.mxu0 }
  0xf4   :  { %v213_v28 = vadd.f32 %v1053_v17, %v212_v25 }
  0xf6   :  { %v256_v31 = vmax.f32 %v213_v28, 0.0 }
  0xfb   :  { %v214_v29 = vpop.f32.mrf.mxu0 }
  0xfc   :  { %v215_v30 = vadd.f32 %v1053_v17, %v214_v29 }
  0xfe   :  { %v257_v32 = vmax.f32 %v215_v30, 0.0 }
 0x100   :  { %v275_v33 = vpack.c.bf16 %v257_v32, %v256_v31 }
 0x102   :  { %818 = vmatmul.msk.bf16.gmra.mxu1 %vm301_vm2, %v275_v33 }
 0x103   :  { %v217_v34 = vpop.f32.mrf.mxu0 }
 0x104   :  { %v218_v35 = vadd.f32 %v1053_v17, %v217_v34 }
 0x106   :  { %v258_v38 = vmax.f32 %v218_v35, 0.0 }
 0x10b   :  { %v219_v36 = vpop.f32.mrf.mxu0 }
 0x10c   :  { %v220_v37 = vadd.f32 %v1053_v17, %v219_v36 }
 0x10e   :  { %v259_v39 = vmax.f32 %v220_v37, 0.0 }
 0x10f   :  { %v350_v40 = vpop.f32.mrf.mxu1 }
 0x110   :  { %v276_v41 = vpack.c.bf16 %v259_v39, %v258_v38  ;;  %v351_v44 = vadd.f32 %v1104_v42, %v350_v40 }
 0x112   :  { %819 = vmatmul.msk.bf16.gmra.mxu1 %vm301_vm2, %v276_v41  ;;  %v415_v47 = vmax.f32 %v351_v44, 0.0 }
 0x113   :  { %v222_v43 = vpop.f32.mrf.mxu0 }
 0x114   :  { %v223_v48 = vadd.f32 %v1053_v17, %v222_v43 }
 0x116   :  { %v260_v53 = vmax.f32 %v223_v48, 0.0 }
 0x117   :  { %v352_v45 = vpop.f32.mrf.mxu1 }
 0x118   :  { %v353_v46 = vadd.f32 %v1104_v42, %v352_v45 }
 0x11a   :  { %v416_v49 = vmax.f32 %v353_v46, 0.0 }
 0x11b   :  { %v224_v50 = vpop.f32.mrf.mxu0  ;;  %v400_v5 = vpop.f32.mrf.mxu3 }
 0x11c   :  { %v441_v51 = vpack.c.bf16 %v416_v49, %v415_v47  ;;  %v225_v52 = vadd.f32 %v1053_v17, %v224_v50  ;;  %v401_v7 = vadd.f32 %v1104_v42, %v400_v5  ;;  %v1149_v5 = vld [vmem:[%s1244_s6] ss:$0 sm:$0xff]  ;;  %s951_s6 = smov [#allocation2]  }
 0x11d   :  { %s724_s13 = sshll.u32 %s951_s6, 4  ;;  %s725_s13 = int_to_ptr.vmem [resolvable:$true] %s724_s13 }
 0x11e   :  { %v261_v54 = vmax.f32 %v225_v52, 0.0  ;;  %832 = vmatmul.msk.bf16.vlgmr.msra.gmra.mxu2 %vm301_vm2, %v441_v51  ;;  %v435_v9 = vmax.f32 %v401_v7, 0.0 }
 0x11f   :  { %v355_v55 = vpop.f32.mrf.mxu1 }
 0x120   :  { %v277_v56 = vpack.c.bf16 %v261_v54, %v260_v53  ;;  %v356_v57 = vadd.f32 %v1104_v42, %v355_v55 }
 0x122   :  { %820 = vmatmul.msk.bf16.gmra.mxu1 %vm301_vm2, %v277_v56  ;;  %v417_v60 = vmax.f32 %v356_v57, 0.0 }
 0x123   :  { %v402_v8 = vpop.f32.mrf.mxu3 }
 0x124   :  { %v403_v10 = vadd.f32 %v1104_v42, %v402_v8 }
 0x126   :  { %v436_v13 = vmax.f32 %v403_v10, 0.0 }
 0x127   :  { %v357_v58 = vpop.f32.mrf.mxu1 }
 0x128   :  { %v358_v59 = vadd.f32 %v1104_v42, %v357_v58  ;;  %v451_v15 = vpack.c.bf16 %v436_v13, %v435_v9  ;;  %v587_v9 = vlaneseq }
 0x12a   :  { %v418_v61 = vmax.f32 %v358_v59, 0.0  ;;  %842 = vmatmul.msk.bf16.vlgmr.msra.gmra.mxu3 %vm301_vm2, %v451_v15 }
 0x12b   :  { %v405_v20 = vpop.f32.mrf.mxu3 }
 0x12c   :  { %v442_v62 = vpack.c.bf16 %v418_v61, %v417_v60  ;;  %v406_v22 = vadd.f32 %v1104_v42, %v405_v20 }
 0x12e   :  { %833 = vmatmul.msk.bf16.gmra.mxu2 %vm301_vm2, %v442_v62  ;;  %v437_v24 = vmax.f32 %v406_v22, 0.0 }
 0x12f   :  { %v360_v63 = vpop.f32.mrf.mxu1 }
 0x130   :  { %v361_v17 = vadd.f32 %v1104_v42, %v360_v63 }
 0x132   :  { %v419_v2 = vmax.f32 %v361_v17, 0.0 }
 0x133   :  { %v407_v23 = vpop.f32.mrf.mxu3 }
 0x134   :  { %v408_v25 = vadd.f32 %v1104_v42, %v407_v23 }
 0x136   :  { %v438_v28 = vmax.f32 %v408_v25, 0.0 }
 0x137   :  { %v362_v0 = vpop.f32.mrf.mxu1 }
 0x138   :  { %v363_v1 = vadd.f32 %v1104_v42, %v362_v0  ;;  %v452_v30 = vpack.c.bf16 %v438_v28, %v437_v24 }
 0x13a   :  { %v420_v3 = vmax.f32 %v363_v1, 0.0  ;;  %843 = vmatmul.msk.bf16.gmra.mxu3 %vm301_vm2, %v452_v30 }
 0x13b   :  { %v410_v34 = vpop.f32.mrf.mxu3 }
 0x13c   :  { %v443_v4 = vpack.c.bf16 %v420_v3, %v419_v2  ;;  %v411_v36 = vadd.f32 %v1104_v42, %v410_v34 }
 0x13e   :  { %834 = vmatmul.msk.bf16.gmra.mxu2 %vm301_vm2, %v443_v4  ;;  %v439_v38 = vmax.f32 %v411_v36, 0.0 }
 0x13f   :  { %v365_v6 = vpop.f32.mrf.mxu1 }
 0x140   :  { %v366_v11 = vadd.f32 %v1104_v42, %v365_v6 }
 0x142   :  { %v421_v16 = vmax.f32 %v366_v11, 0.0 }
 0x143   :  { %v412_v37 = vpop.f32.mrf.mxu3 }
 0x144   :  { %v413_v39 = vadd.f32 %v1104_v42, %v412_v37 }
 0x146   :  { %v440_v43 = vmax.f32 %v413_v39, 0.0 }
 0x147   :  { %v367_v12 = vpop.f32.mrf.mxu1 }
 0x148   :  { %v368_v14 = vadd.f32 %v1104_v42, %v367_v12  ;;  %v453_v45 = vpack.c.bf16 %v440_v43, %v439_v38  ;;  %v1153_v12 = vand.u32 127, %v587_v9 }
 0x14a   :  { %v422_v18 = vmax.f32 %v368_v14, 0.0  ;;  %844 = vmatmul.msk.bf16.gmra.mxu3 %vm301_vm2, %v453_v45  ;;  %vm589_vm3 = vcmp.ge.s32.totalorder %v1153_v12, 64 }
 0x14c   :  { %v444_v19 = vpack.c.bf16 %v422_v18, %v421_v16 }
 0x14e   :  { %835 = vmatmul.msk.bf16.gmra.mxu2 %vm301_vm2, %v444_v19 }
 0x14f   :  { %v370_v21 = vpop.f32.mrf.mxu1 }
 0x150   :  { %v371_v26 = vadd.f32 %v1104_v42, %v370_v21 }
 0x152   :  { %v423_v31 = vmax.f32 %v371_v26, 0.0 }
 0x157   :  { %v372_v27 = vpop.f32.mrf.mxu1 }
 0x158   :  { %v373_v29 = vadd.f32 %v1104_v42, %v372_v27 }
 0x15a   :  { %v424_v32 = vmax.f32 %v373_v29, 0.0 }
 0x15c   :  { %v445_v33 = vpack.c.bf16 %v424_v32, %v423_v31 }
 0x15e   :  { %836 = vmatmul.msk.bf16.gmra.mxu2 %vm301_vm2, %v445_v33 }
 0x15f   :  { %v375_v35 = vpop.f32.mrf.mxu1 }
 0x160   :  { %v376_v40 = vadd.f32 %v1104_v42, %v375_v35 }
 0x162   :  { %v425_v46 = vmax.f32 %v376_v40, 0.0 }
 0x167   :  { %v377_v41 = vpop.f32.mrf.mxu1 }
 0x168   :  { %v378_v44 = vadd.f32 %v1104_v42, %v377_v41 }
 0x16a   :  { %v426_v47 = vmax.f32 %v378_v44, 0.0 }
 0x16c   :  { %v446_v48 = vpack.c.bf16 %v426_v47, %v425_v46 }
 0x16e   :  { %837 = vmatmul.msk.bf16.gmra.mxu2 %vm301_vm2, %v446_v48 }
 0x16f   :  { %v380_v49 = vpop.f32.mrf.mxu1 }
 0x170   :  { %v381_v50 = vadd.f32 %v1104_v42, %v380_v49 }
 0x172   :  { %v427_v53 = vmax.f32 %v381_v50, 0.0 }
 0x177   :  { %v382_v51 = vpop.f32.mrf.mxu1 }
 0x178   :  { %v383_v52 = vadd.f32 %v1104_v42, %v382_v51 }
 0x17a   :  { %v428_v54 = vmax.f32 %v383_v52, 0.0 }
 0x17c   :  { %v447_v55 = vpack.c.bf16 %v428_v54, %v427_v53 }
 0x17e   :  { %838 = vmatmul.msk.bf16.gmra.mxu2 %vm301_vm2, %v447_v55 }
 0x17f   :  { %v385_v56 = vpop.f32.mrf.mxu1 }
 0x180   :  { %v386_v57 = vadd.f32 %v1104_v42, %v385_v56 }
 0x182   :  { %v429_v60 = vmax.f32 %v386_v57, 0.0 }
 0x187   :  { %v387_v58 = vpop.f32.mrf.mxu1 }
 0x188   :  { %v388_v59 = vadd.f32 %v1104_v42, %v387_v58 }
 0x18a   :  { %v430_v61 = vmax.f32 %v388_v59, 0.0 }
 0x18c   :  { %v448_v62 = vpack.c.bf16 %v430_v61, %v429_v60 }
 0x18e   :  { %839 = vmatmul.msk.bf16.gmra.mxu2 %vm301_vm2, %v448_v62 }
 0x18f   :  { %v390_v63 = vpop.f32.mrf.mxu1 }
 0x190   :  { %v391_v17 = vadd.f32 %v1104_v42, %v390_v63 }
 0x192   :  { %v431_v2 = vmax.f32 %v391_v17, 0.0 }
 0x197   :  { %v392_v0 = vpop.f32.mrf.mxu1 }
 0x198   :  { %v393_v1 = vadd.f32 %v1104_v42, %v392_v0 }
 0x19a   :  { %v432_v3 = vmax.f32 %v393_v1, 0.0 }
 0x19c   :  { %v449_v4 = vpack.c.bf16 %v432_v3, %v431_v2 }
 0x19e   :  { %840 = vmatmul.msk.bf16.gmra.mxu2 %vm301_vm2, %v449_v4 }
 0x19f   :  { %v395_v6 = vpop.f32.mrf.mxu1 }
 0x1a0   :  { %v396_v10 = vadd.f32 %v1104_v42, %v395_v6 }
 0x1a1   :  { %v522_v7 = vpop.f32.mrf.mxu2 }
 0x1a2   :  { %v523_v8 = vadd.f32 %v1149_v5, %v522_v7  ;;  %v433_v16 = vmax.f32 %v396_v10, 0.0 }
 0x1a4   :  { %873 = vtanh.f32 %v523_v8 }
 0x1a7   :  { %v397_v11 = vpop.f32.mrf.mxu1 }
 0x1a8   :  { %v398_v13 = vadd.f32 %v1104_v42, %v397_v11 }
 0x1a9   :  { %v524_v14 = vpop.f32.mrf.mxu2 }
 0x1aa   :  { %v874_v15 = vpop.eup %873  ;;  %v434_v18 = vmax.f32 %v398_v13, 0.0  ;;  %v525_v19 = vadd.f32 %v1149_v5, %v524_v14 }
 0x1ab   :  { %v616_v20 = vmul.f32 11.0, %v874_v15 }
 0x1ac   :  { %v450_v21 = vpack.c.bf16 %v434_v18, %v433_v16  ;;  %875 = vtanh.f32 %v525_v19 }
 0x1ad   :  { %v642_v22 = vadd.f32 -9.0, %v616_v20  ;;  %v572_v47 = vpop.f32.mrf.mxu3 }
 0x1ae   :  { %841 = vmatmul.msk.bf16.gmra.mxu2 %vm301_vm2, %v450_v21  ;;  %v573_v56 = vadd.f32 %v1149_v5, %v572_v47 }
 0x1af   :  { %v668_v23 = vsel %vm589_vm3, %v642_v22, %v523_v8 }
 0x1b0   :  { %694 = vst [vmem:[#allocation2] sm:$0xff] %v668_v23 }
 0x1b1   :  { %v527_v24 = vpop.f32.mrf.mxu2 }
 0x1b2   :  { %v876_v42 = vpop.eup %875  ;;  %v528_v25 = vadd.f32 %v1149_v5, %v527_v24 }
 0x1b3   :  { %v617_v26 = vmul.f32 11.0, %v876_v42 }
 0x1b4   :  { %877 = vtanh.f32 %v528_v25 }
 0x1b5   :  { %v643_v27 = vadd.f32 -9.0, %v617_v26  ;;  %v574_v54 = vpop.f32.mrf.mxu3 }
 0x1b6   :  { %v575_v57 = vadd.f32 %v1149_v5, %v574_v54 }
 0x1b7   :  { %v669_v28 = vsel %vm589_vm3, %v643_v27, %v525_v19 }
 0x1b8   :  { %695 = vst [vmem:[#allocation2 + $0x8] sm:$0xff] %v669_v28 }
 0x1b9   :  { %v529_v29 = vpop.f32.mrf.mxu2 }
 0x1ba   :  { %v878_v30 = vpop.eup %877  ;;  %v530_v31 = vadd.f32 %v1149_v5, %v529_v29 }
 0x1bb   :  { %v618_v32 = vmul.f32 11.0, %v878_v30 }
 0x1bc   :  { %879 = vtanh.f32 %v530_v31 }
 0x1bd   :  { %v644_v33 = vadd.f32 -9.0, %v618_v32  ;;  %v577_v63 = vpop.f32.mrf.mxu3 }
 0x1be   :  { %v578_v18 = vadd.f32 %v1149_v5, %v577_v63 }
 0x1bf   :  { %v670_v34 = vsel %vm589_vm3, %v644_v33, %v528_v25 }
 0x1c0   :  { %696 = vst [vmem:[#allocation2 + $0x10] sm:$0xff] %v670_v34 }
 0x1c1   :  { %v532_v35 = vpop.f32.mrf.mxu2 }
 0x1c2   :  { %v880_v36 = vpop.eup %879  ;;  %v533_v37 = vadd.f32 %v1149_v5, %v532_v35 }
 0x1c3   :  { %v619_v38 = vmul.f32 11.0, %v880_v36 }
 0x1c4   :  { %881 = vtanh.f32 %v533_v37 }
 0x1c5   :  { %v645_v39 = vadd.f32 -9.0, %v619_v38  ;;  %v579_v15 = vpop.f32.mrf.mxu3 }
 0x1c6   :  { %v580_v19 = vadd.f32 %v1149_v5, %v579_v15 }
 0x1c7   :  { %v671_v40 = vsel %vm589_vm3, %v645_v39, %v530_v31 }
 0x1c8   :  { %697 = vst [vmem:[#allocation2 + $0x18] sm:$0xff] %v671_v40 }
 0x1c9   :  { %v534_v41 = vpop.f32.mrf.mxu2 }
 0x1ca   :  { %v882_v43 = vpop.eup %881  ;;  %v535_v44 = vadd.f32 %v1149_v5, %v534_v41 }
 0x1cb   :  { %v620_v45 = vmul.f32 11.0, %v882_v43 }
 0x1cc   :  { %883 = vtanh.f32 %v535_v44 }
 0x1cd   :  { %v646_v46 = vadd.f32 -9.0, %v620_v45  ;;  %v582_v42 = vpop.f32.mrf.mxu3 }
 0x1ce   :  { %v583_v41 = vadd.f32 %v1149_v5, %v582_v42 }
 0x1cf   :  { %v672_v48 = vsel %vm589_vm3, %v646_v46, %v533_v37 }
 0x1d0   :  { %698 = vst [vmem:[#allocation2 + $0x20] sm:$0xff] %v672_v48 }
 0x1d1   :  { %v537_v49 = vpop.f32.mrf.mxu2 }
 0x1d2   :  { %v884_v50 = vpop.eup %883  ;;  %v538_v51 = vadd.f32 %v1149_v5, %v537_v49 }
 0x1d3   :  { %v621_v52 = vmul.f32 11.0, %v884_v50 }
 0x1d4   :  { %885 = vtanh.f32 %v538_v51 }
 0x1d5   :  { %v647_v53 = vadd.f32 -9.0, %v621_v52  ;;  %887 = vtanh.f32 %v573_v56  ;;  %v584_v39 = vpop.f32.mrf.mxu3 }
 0x1d6   :  { %889 = vtanh.f32 %v575_v57  ;;  %v585_v43 = vadd.f32 %v1149_v5, %v584_v39 }
 0x1d7   :  { %v673_v55 = vsel %vm589_vm3, %v647_v53, %v535_v44 }
 0x1d8   :  { %699 = vst [vmem:[#allocation2 + $0x28] sm:$0xff] %v673_v55 }
 0x1d9   :  { %v539_v58 = vpop.f32.mrf.mxu2 }
 0x1da   :  { %v886_v59 = vpop.eup %885  ;;  %v540_v60 = vadd.f32 %v1149_v5, %v539_v58 }
 0x1db   :  { %v622_v61 = vmul.f32 11.0, %v886_v59  ;;  %v888_v17 = vpop.eup %887 }
 0x1dc   :  { %891 = vtanh.f32 %v540_v60  ;;  %v890_v1 = vpop.eup %889  ;;  %v636_v2 = vmul.f32 11.0, %v888_v17 }
 0x1dd   :  { %v648_v62 = vadd.f32 -9.0, %v622_v61  ;;  %v637_v4 = vmul.f32 11.0, %v890_v1 }
 0x1de   :  { %v662_v8 = vadd.f32 -9.0, %v636_v2 }
 0x1df   :  { %v674_v0 = vsel %vm589_vm3, %v648_v62, %v538_v51  ;;  %v663_v10 = vadd.f32 -9.0, %v637_v4 }
 0x1e0   :  { %700 = vst [vmem:[#allocation2 + $0x30] sm:$0xff] %v674_v0  ;;  %v688_v11 = vsel %vm589_vm3, %v662_v8, %v573_v56 }
 0x1e1   :  { %v542_v3 = vpop.f32.mrf.mxu2  ;;  %714 = vst [vmem:[#allocation2 + $0xa0] sm:$0xff] %v688_v11  ;;  %v689_v14 = vsel %vm589_vm3, %v663_v10, %v575_v57 }
 0x1e2   :  { %v892_v6 = vpop.eup %891  ;;  %v543_v7 = vadd.f32 %v1149_v5, %v542_v3  ;;  %715 = vst [vmem:[#allocation2 + $0xa8] sm:$0xff] %v689_v14 }
 0x1e3   :  { %v623_v9 = vmul.f32 11.0, %v892_v6 }
 0x1e4   :  { %893 = vtanh.f32 %v543_v7 }
 0x1e5   :  { %v649_v13 = vadd.f32 -9.0, %v623_v9  ;;  %895 = vtanh.f32 %v578_v18 }
 0x1e6   :  { %897 = vtanh.f32 %v580_v19 }
 0x1e7   :  { %v675_v16 = vsel %vm589_vm3, %v649_v13, %v540_v60 }
 0x1e8   :  { %701 = vst [vmem:[#allocation2 + $0x38] sm:$0xff] %v675_v16 }
 0x1e9   :  { %v544_v20 = vpop.f32.mrf.mxu2 }
 0x1ea   :  { %v894_v21 = vpop.eup %893  ;;  %v545_v22 = vadd.f32 %v1149_v5, %v544_v20 }
 0x1eb   :  { %v624_v23 = vmul.f32 11.0, %v894_v21  ;;  %v896_v25 = vpop.eup %895 }
 0x1ec   :  { %899 = vtanh.f32 %v545_v22  ;;  %v898_v27 = vpop.eup %897  ;;  %v638_v28 = vmul.f32 11.0, %v896_v25 }
 0x1ed   :  { %v650_v24 = vadd.f32 -9.0, %v624_v23  ;;  %v639_v30 = vmul.f32 11.0, %v898_v27 }
 0x1ee   :  { %v664_v33 = vadd.f32 -9.0, %v638_v28 }
 0x1ef   :  { %v676_v26 = vsel %vm589_vm3, %v650_v24, %v543_v7  ;;  %v665_v35 = vadd.f32 -9.0, %v639_v30 }
 0x1f0   :  { %702 = vst [vmem:[#allocation2 + $0x40] sm:$0xff] %v676_v26  ;;  %v690_v36 = vsel %vm589_vm3, %v664_v33, %v578_v18 }
 0x1f1   :  { %v547_v29 = vpop.f32.mrf.mxu2  ;;  %716 = vst [vmem:[#allocation2 + $0xb0] sm:$0xff] %v690_v36  ;;  %v691_v38 = vsel %vm589_vm3, %v665_v35, %v580_v19 }
 0x1f2   :  { %v900_v31 = vpop.eup %899  ;;  %v548_v32 = vadd.f32 %v1149_v5, %v547_v29  ;;  %717 = vst [vmem:[#allocation2 + $0xb8] sm:$0xff] %v691_v38 }
 0x1f3   :  { %v625_v34 = vmul.f32 11.0, %v900_v31 }
 0x1f4   :  { %901 = vtanh.f32 %v548_v32 }
 0x1f5   :  { %v651_v37 = vadd.f32 -9.0, %v625_v34  ;;  %903 = vtanh.f32 %v583_v41 }
 0x1f6   :  { %905 = vtanh.f32 %v585_v43 }
 0x1f7   :  { %v677_v40 = vsel %vm589_vm3, %v651_v37, %v545_v22 }
 0x1f8   :  { %703 = vst [vmem:[#allocation2 + $0x48] sm:$0xff] %v677_v40 }
 0x1f9   :  { %v549_v44 = vpop.f32.mrf.mxu2 }
 0x1fa   :  { %v902_v45 = vpop.eup %901  ;;  %v550_v46 = vadd.f32 %v1149_v5, %v549_v44 }
 0x1fb   :  { %v626_v47 = vmul.f32 11.0, %v902_v45  ;;  %v904_v49 = vpop.eup %903 }
 0x1fc   :  { %907 = vtanh.f32 %v550_v46  ;;  %v906_v51 = vpop.eup %905  ;;  %v640_v52 = vmul.f32 11.0, %v904_v49 }
 0x1fd   :  { %v652_v48 = vadd.f32 -9.0, %v626_v47  ;;  %v641_v54 = vmul.f32 11.0, %v906_v51 }
 0x1fe   :  { %v666_v57 = vadd.f32 -9.0, %v640_v52 }
 0x1ff   :  { %v678_v50 = vsel %vm589_vm3, %v652_v48, %v548_v32  ;;  %v667_v59 = vadd.f32 -9.0, %v641_v54 }
 0x200   :  { %704 = vst [vmem:[#allocation2 + $0x50] sm:$0xff] %v678_v50  ;;  %v692_v60 = vsel %vm589_vm3, %v666_v57, %v583_v41 }
 0x201   :  { %v552_v53 = vpop.f32.mrf.mxu2  ;;  %718 = vst [vmem:[#allocation2 + $0xc0] sm:$0xff] %v692_v60  ;;  %v693_v62 = vsel %vm589_vm3, %v667_v59, %v585_v43 }
 0x202   :  { %v908_v55 = vpop.eup %907  ;;  %v553_v56 = vadd.f32 %v1149_v5, %v552_v53  ;;  %719 = vst [vmem:[#allocation2 + $0xc8] sm:$0xff] %v693_v62 }
 0x203   :  { %v627_v58 = vmul.f32 11.0, %v908_v55 }
 0x204   :  { %909 = vtanh.f32 %v553_v56 }
 0x205   :  { %v653_v61 = vadd.f32 -9.0, %v627_v58 }
 0x207   :  { %v679_v63 = vsel %vm589_vm3, %v653_v61, %v550_v46 }
 0x208   :  { %705 = vst [vmem:[#allocation2 + $0x58] sm:$0xff] %v679_v63 }
 0x209   :  { %v554_v17 = vpop.f32.mrf.mxu2 }
 0x20a   :  { %v910_v0 = vpop.eup %909  ;;  %v555_v1 = vadd.f32 %v1149_v5, %v554_v17 }
 0x20b   :  { %v628_v2 = vmul.f32 11.0, %v910_v0 }
 0x20c   :  { %911 = vtanh.f32 %v555_v1 }
 0x20d   :  { %v654_v3 = vadd.f32 -9.0, %v628_v2 }
 0x20f   :  { %v680_v4 = vsel %vm589_vm3, %v654_v3, %v553_v56 }
 0x210   :  { %706 = vst [vmem:[#allocation2 + $0x60] sm:$0xff] %v680_v4 }
 0x211   :  { %v557_v6 = vpop.f32.mrf.mxu2 }
 0x212   :  { %v912_v7 = vpop.eup %911  ;;  %v558_v8 = vadd.f32 %v1149_v5, %v557_v6 }
 0x213   :  { %v629_v9 = vmul.f32 11.0, %v912_v7 }
 0x214   :  { %913 = vtanh.f32 %v558_v8 }
 0x215   :  { %v655_v10 = vadd.f32 -9.0, %v629_v9 }
 0x217   :  { %v681_v11 = vsel %vm589_vm3, %v655_v10, %v555_v1 }
 0x218   :  { %707 = vst [vmem:[#allocation2 + $0x68] sm:$0xff] %v681_v11 }
 0x219   :  { %v559_v13 = vpop.f32.mrf.mxu2 }
 0x21a   :  { %v914_v14 = vpop.eup %913  ;;  %v560_v15 = vadd.f32 %v1149_v5, %v559_v13 }
 0x21b   :  { %v630_v16 = vmul.f32 11.0, %v914_v14 }
 0x21c   :  { %915 = vtanh.f32 %v560_v15 }
 0x21d   :  { %v656_v18 = vadd.f32 -9.0, %v630_v16 }
 0x21f   :  { %v682_v19 = vsel %vm589_vm3, %v656_v18, %v558_v8 }
 0x220   :  { %708 = vst [vmem:[#allocation2 + $0x70] sm:$0xff] %v682_v19 }
 0x221   :  { %v562_v20 = vpop.f32.mrf.mxu2 }
 0x222   :  { %v916_v21 = vpop.eup %915  ;;  %v563_v22 = vadd.f32 %v1149_v5, %v562_v20 }
 0x223   :  { %v631_v23 = vmul.f32 11.0, %v916_v21 }
 0x224   :  { %917 = vtanh.f32 %v563_v22 }
 0x225   :  { %v657_v24 = vadd.f32 -9.0, %v631_v23 }
 0x227   :  { %v683_v42 = vsel %vm589_vm3, %v657_v24, %v560_v15 }
 0x228   :  { %709 = vst [vmem:[#allocation2 + $0x78] sm:$0xff] %v683_v42 }
 0x229   :  { %v564_v25 = vpop.f32.mrf.mxu2 }
 0x22a   :  { %v918_v26 = vpop.eup %917  ;;  %v565_v27 = vadd.f32 %v1149_v5, %v564_v25 }
 0x22b   :  { %v632_v28 = vmul.f32 11.0, %v918_v26 }
 0x22c   :  { %919 = vtanh.f32 %v565_v27 }
 0x22d   :  { %v658_v29 = vadd.f32 -9.0, %v632_v28 }
 0x22f   :  { %v684_v30 = vsel %vm589_vm3, %v658_v29, %v563_v22 }
 0x230   :  { %710 = vst [vmem:[#allocation2 + $0x80] sm:$0xff] %v684_v30 }
 0x231   :  { %v567_v31 = vpop.f32.mrf.mxu2 }
 0x232   :  { %v920_v32 = vpop.eup %919  ;;  %v568_v33 = vadd.f32 %v1149_v5, %v567_v31 }
 0x233   :  { %v633_v34 = vmul.f32 11.0, %v920_v32 }
 0x234   :  { %921 = vtanh.f32 %v568_v33 }
 0x235   :  { %v659_v35 = vadd.f32 -9.0, %v633_v34 }
 0x237   :  { %v685_v36 = vsel %vm589_vm3, %v659_v35, %v565_v27 }
 0x238   :  { %711 = vst [vmem:[#allocation2 + $0x88] sm:$0xff] %v685_v36 }
 0x239   :  { %v569_v37 = vpop.f32.mrf.mxu2 }
 0x23a   :  { %v922_v38 = vpop.eup %921  ;;  %v570_v39 = vadd.f32 %v1149_v5, %v569_v37 }
 0x23b   :  { %v634_v40 = vmul.f32 11.0, %v922_v38 }
 0x23c   :  { %923 = vtanh.f32 %v570_v39 }
 0x23d   :  { %v660_v41 = vadd.f32 -9.0, %v634_v40 }
 0x23f   :  { %v686_v43 = vsel %vm589_vm3, %v660_v41, %v568_v33 }
 0x240   :  { %712 = vst [vmem:[#allocation2 + $0x90] sm:$0xff] %v686_v43 }
 0x242   :  { %v924_v44 = vpop.eup %923 }
 0x243   :  { %v635_v45 = vmul.f32 11.0, %v924_v44 }
 0x245   :  { %v661_v46 = vadd.f32 -9.0, %v635_v45 }
 0x247   :  { %v687_v5 = vsel %vm589_vm3, %v661_v46, %v570_v39 }
 0x248   :  { %713 = vst [vmem:[#allocation2 + $0x98] sm:$0xff] %v687_v5 }
 0x249   :  { %732 = dma.vmem_to_hbm [thread:$0]  %s725_s13, 3328, %s727_s16, [#allocation3], %s952_s17, %s952_s17, %s953_s18  }
 0x24a   :  { %949 = dma.done.wait [#allocation3], 3328  }
 0x24b   :  { %950 = vsyncadd [#allocation3], 4294963968 }
 0x24c   :  { %737 = vsyncpa [#allocation3], 1 }

</bundles_post_ra>
